<compile_context>
chip_gen: v7x
topology: tpu7x:2x2x1
jax: 0.10.0
libtpu: 0.0.40
codegen_flags: <defaults>
</compile_context>

<pallas_src>
import jax
import jax.numpy as jnp
import numpy as np
from jax import lax
from jax.experimental import pallas as pl
from jax.experimental.pallas import tpu as pltpu

_F = 20          # feature width of the module
_W_ROW = 0       # rows  0:20 of the packed slab -> W           (PyTorch (out, in))
_RWT_ROW = 24    # rows 24:44                    -> rand_weight.T
_PACK_ROWS = 48  # padded so every slice start is sublane (8)-aligned
_IM = 256        # instances per grid step (lane-dense: 2 full vregs wide)


def _fixed_hidden_mlp_kernel(x0t_ref, x1t_ref, p_ref, b_ref, out_ref):
    # Transposed formulation: columns are instances (lane axis), features are rows.
    w = p_ref[_W_ROW:_W_ROW + _F, :]          # (20, 20) Linear weight, (out, in)
    rwt = p_ref[_RWT_ROW:_RWT_ROW + _F, :]    # (20, 20) rand_weight.T
    b = b_ref[...]                            # (20, 1)  bias column (lane-broadcast)

    def chain(xt):
        # (x @ W.T + b).T              == W @ x.T + b[:, None]
        h = jnp.dot(w, xt, preferred_element_type=jnp.float32) + b
        # relu(h @ rand_weight + 1).T  == relu(rand_weight.T @ h.T + 1)
        h = jnp.maximum(jnp.dot(rwt, h, preferred_element_type=jnp.float32) + 1.0, 0.0)
        # second pass through the same Linear
        h = jnp.dot(w, h, preferred_element_type=jnp.float32) + b
        return h                               # (20, IM)

    h0 = chain(x0t_ref[...])                   # row 0 of every instance
    h1 = chain(x1t_ref[...])                   # row 1 of every instance

    # Per-instance reductions over the 20 features via a ones(1,20) @ h matmul:
    # result stays lane-major (1, IM) with zero cross-lane XLU work.
    ones_row = jnp.ones((1, _F), jnp.float32)
    s = jnp.dot(ones_row, h0 + h1, preferred_element_type=jnp.float32)          # sum(h)
    sa = jnp.dot(ones_row, jnp.abs(h0) + jnp.abs(h1),
                 preferred_element_type=jnp.float32)                            # sum(|h|)

    # Closed-form halving count (exact for normal floats; sa >= 0 always).
    # n clipped to 126 keeps scale a normal float (loop would only go further
    # for sa >= 2**126, far outside this module's range).
    bits = pltpu.bitcast(sa, jnp.int32)
    exp_f = (bits >> 23) & 0xFF
    mant = bits & 0x7FFFFF
    n = jnp.where(sa > 1.0, (exp_f - 127) + (mant != 0).astype(jnp.int32), 0)
    n = jnp.clip(n, 0, 126)
    scale = pltpu.bitcast((127 - n) << 23, jnp.float32)    # == 2.0 ** -n, bit-exact

    # return x.sum():  sum(h * 2**-n) == sum(h) * 2**-n exactly (power-of-two scale).
    out_ref[...] = s * scale


def _mlp_pallas(x0t, x1t, packed, bcol, im):
    n_inst = x0t.shape[1]
    assert n_inst % im == 0
    return pl.pallas_call(
        _fixed_hidden_mlp_kernel,
        out_shape=jax.ShapeDtypeStruct((1, n_inst), jnp.float32),
        grid=(n_inst // im,),
        in_specs=[
            pl.BlockSpec((_F, im), lambda i: (0, i)),            # row-0 activations
            pl.BlockSpec((_F, im), lambda i: (0, i)),            # row-1 activations
            pl.BlockSpec((_PACK_ROWS, _F), lambda i: (0, 0)),    # packed weights (resident)
            pl.BlockSpec((_F, 1), lambda i: (0, 0)),             # bias column (resident)
        ],
        out_specs=pl.BlockSpec((1, im), lambda i: (0, i)),       # lane-dense output row
        compiler_params=pltpu.CompilerParams(
            dimension_semantics=("parallel",)),
    )(x0t, x1t, packed, bcol)


def pack_params(w, b, rand_weight):
    """Pack parameters ONCE (hoisted out of the per-forward path, review item 2)."""
    w = jnp.asarray(w, jnp.float32)                   # (20, 20) PyTorch (out, in)
    rwt = jnp.asarray(rand_weight, jnp.float32).T     # (20, 20)
    packed = jnp.zeros((_PACK_ROWS, _F), jnp.float32)
    packed = packed.at[_W_ROW:_W_ROW + _F, :].set(w)
    packed = packed.at[_RWT_ROW:_RWT_ROW + _F, :].set(rwt)
    bcol = jnp.asarray(b, jnp.float32).reshape(_F, 1)
    return packed, bcol


@jax.jit
def fixed_hidden_mlp_batched(xs, packed, bcol):
    """xs: (N, 2, 20) independent instances -> (N,) scalars (one x.sum() each)."""
    xs = jnp.asarray(xs, jnp.float32)
    n = xs.shape[0]
    im = _IM if n >= _IM else n                 # block == full array when n < _IM
    pad = (-n) % im
    if pad:
        xs = jnp.concatenate([xs, jnp.zeros((pad,) + xs.shape[1:], xs.dtype)], axis=0)
    # Wrapper-side layout plumbing: instances onto the lane axis.
    x0t = xs[:, 0, :].T                         # (20, Np)
    x1t = xs[:, 1, :].T                         # (20, Np)
    out = _mlp_pallas(x0t, x1t, packed, bcol, im)   # (1, Np)
    return out[0, :n]


@jax.jit
def fixed_hidden_mlp(x, packed, bcol):
    """Single-module forward: x (2, 20) -> scalar, matching FixedhiddenMLP.forward."""
    return fixed_hidden_mlp_batched(x[jnp.newaxis], packed, bcol)[0]


def _reference_single(x, w, b, rand_weight):
    h = x @ w.T + b
    h = jnp.maximum(h @ rand_weight + 1.0, 0.0)
    h = h @ w.T + b
    h = lax.while_loop(lambda hh: jnp.sum(jnp.abs(hh)) > 1.0, lambda hh: hh * 0.5, h)
    return jnp.sum(h)


if __name__ == "__main__":
    key = jax.random.PRNGKey(0)
    kx, kw, kb, kr, kbatch = jax.random.split(key, 5)

    F = _F
    bound = 1.0 / np.sqrt(F)  # nn.Linear-style uniform init, deterministic
    x = jax.random.uniform(kx, (2, F), jnp.float32)                   # torch.rand((2, 20))
    w = jax.random.uniform(kw, (F, F), jnp.float32, -bound, bound)    # Linear.weight (out, in)
    b = jax.random.uniform(kb, (F,), jnp.float32, -bound, bound)      # Linear.bias
    rand_weight = jax.random.uniform(kr, (F, F), jnp.float32)         # torch.rand((20, 20))

    # Parameter packing done once, outside the per-call path.
    packed, bcol = pack_params(w, b, rand_weight)

    # --- single-instance forward (the module as specified) ---
    out = jax.block_until_ready(fixed_hidden_mlp(x, packed, bcol))
    ref = jax.block_until_ready(_reference_single(x, w, b, rand_weight))
    assert np.allclose(np.asarray(out), np.asarray(ref), rtol=1e-4, atol=1e-4), (out, ref)
    assert float(jnp.abs(out)) <= 1.0 + 1e-6   # post-loop invariant: |sum| <= sum|x| <= 1

    # --- batched throughput path: many independent instances in one kernel ---
    n_inst = 1024
    xs = jax.random.uniform(kbatch, (n_inst, 2, F), jnp.float32)
    outs = jax.block_until_ready(fixed_hidden_mlp_batched(xs, packed, bcol))
    refs = jax.block_until_ready(
        jax.vmap(_reference_single, in_axes=(0, None, None, None))(xs, w, b, rand_weight))
    assert outs.shape == (n_inst,)
    assert np.allclose(np.asarray(outs), np.asarray(refs), rtol=1e-4, atol=1e-4), (
        float(np.max(np.abs(np.asarray(outs) - np.asarray(refs)))))

    print("KERNEL_OK")
</pallas_src>

<mosaic_0001>
module attributes {stable_mosaic.version = 11 : i64} {
  func.func @_fixed_hidden_mlp_kernel(%arg0: i32, %arg1: memref<20x1xf32, #tpu.memory_space<vmem>>, %arg2: memref<20x1xf32, #tpu.memory_space<vmem>>, %arg3: memref<48x20xf32, #tpu.memory_space<vmem>>, %arg4: memref<20x1xf32, #tpu.memory_space<vmem>>, %arg5: memref<1x1xf32, #tpu.memory_space<vmem>>) attributes {dimension_semantics = [#tpu.dimension_semantics<parallel>], iteration_bounds = array<i64: 1>, scalar_prefetch = 0 : i64, scratch_operands = 0 : i64, tpu.core_type = #tpu.core_type<tc>, window_params = [{transform_indices = @transform_0, window_bounds = array<i64: 20, 1>}, {transform_indices = @transform_1, window_bounds = array<i64: 20, 1>}, {pipeline_mode = #tpu.pipeline_mode<synchronous>, transform_indices = @transform_2, window_bounds = array<i64: 48, 20>}, {pipeline_mode = #tpu.pipeline_mode<synchronous>, transform_indices = @transform_3, window_bounds = array<i64: 20, 1>}, {transform_indices = @transform_4, window_bounds = array<i64: 1, 1>}]} {
    %c0 = arith.constant 0 : index
    %c0_0 = arith.constant 0 : index
    %0 = vector.load %arg3[%c0, %c0_0] : memref<48x20xf32, #tpu.memory_space<vmem>>, vector<20x20xf32>
    %c24 = arith.constant 24 : index
    %c0_1 = arith.constant 0 : index
    %1 = vector.load %arg3[%c24, %c0_1] : memref<48x20xf32, #tpu.memory_space<vmem>>, vector<20x20xf32>
    %c0_2 = arith.constant 0 : index
    %c0_3 = arith.constant 0 : index
    %2 = vector.load %arg4[%c0_2, %c0_3] : memref<20x1xf32, #tpu.memory_space<vmem>>, vector<20x1xf32>
    %c0_4 = arith.constant 0 : index
    %c0_5 = arith.constant 0 : index
    %3 = vector.load %arg1[%c0_4, %c0_5] : memref<20x1xf32, #tpu.memory_space<vmem>>, vector<20x1xf32>
    %cst = arith.constant dense<0.000000e+00> : vector<20x1xf32>
    %4 = tpu.matmul %0, %3, %cst {dimension_numbers = #tpu.dot_dimension_numbers<[1], [0], [0], [1], [0, 0, 1, 1], [], []>} : vector<20x20xf32>, vector<20x1xf32>, vector<20x1xf32> -> vector<20x1xf32>
    %5 = arith.addf %4, %2 : vector<20x1xf32>
    %cst_6 = arith.constant dense<0.000000e+00> : vector<20x1xf32>
    %6 = tpu.matmul %1, %5, %cst_6 {dimension_numbers = #tpu.dot_dimension_numbers<[1], [0], [0], [1], [0, 0, 1, 1], [], []>} : vector<20x20xf32>, vector<20x1xf32>, vector<20x1xf32> -> vector<20x1xf32>
    %cst_7 = arith.constant 1.000000e+00 : f32
    %7 = vector.broadcast %cst_7 : f32 to vector<20x1xf32>
    %8 = arith.addf %6, %7 : vector<20x1xf32>
    %cst_8 = arith.constant 0.000000e+00 : f32
    %9 = vector.broadcast %cst_8 : f32 to vector<20x1xf32>
    %10 = arith.maximumf %8, %9 : vector<20x1xf32>
    %cst_9 = arith.constant dense<0.000000e+00> : vector<20x1xf32>
    %11 = tpu.matmul %0, %10, %cst_9 {dimension_numbers = #tpu.dot_dimension_numbers<[1], [0], [0], [1], [0, 0, 1, 1], [], []>} : vector<20x20xf32>, vector<20x1xf32>, vector<20x1xf32> -> vector<20x1xf32>
    %12 = arith.addf %11, %2 : vector<20x1xf32>
    %c0_10 = arith.constant 0 : index
    %c0_11 = arith.constant 0 : index
    %13 = vector.load %arg2[%c0_10, %c0_11] : memref<20x1xf32, #tpu.memory_space<vmem>>, vector<20x1xf32>
    %cst_12 = arith.constant dense<0.000000e+00> : vector<20x1xf32>
    %14 = tpu.matmul %0, %13, %cst_12 {dimension_numbers = #tpu.dot_dimension_numbers<[1], [0], [0], [1], [0, 0, 1, 1], [], []>} : vector<20x20xf32>, vector<20x1xf32>, vector<20x1xf32> -> vector<20x1xf32>
    %15 = arith.addf %14, %2 : vector<20x1xf32>
    %cst_13 = arith.constant dense<0.000000e+00> : vector<20x1xf32>
    %16 = tpu.matmul %1, %15, %cst_13 {dimension_numbers = #tpu.dot_dimension_numbers<[1], [0], [0], [1], [0, 0, 1, 1], [], []>} : vector<20x20xf32>, vector<20x1xf32>, vector<20x1xf32> -> vector<20x1xf32>
    %cst_14 = arith.constant 1.000000e+00 : f32
    %17 = vector.broadcast %cst_14 : f32 to vector<20x1xf32>
    %18 = arith.addf %16, %17 : vector<20x1xf32>
    %cst_15 = arith.constant 0.000000e+00 : f32
    %19 = vector.broadcast %cst_15 : f32 to vector<20x1xf32>
    %20 = arith.maximumf %18, %19 : vector<20x1xf32>
    %cst_16 = arith.constant dense<0.000000e+00> : vector<20x1xf32>
    %21 = tpu.matmul %0, %20, %cst_16 {dimension_numbers = #tpu.dot_dimension_numbers<[1], [0], [0], [1], [0, 0, 1, 1], [], []>} : vector<20x20xf32>, vector<20x1xf32>, vector<20x1xf32> -> vector<20x1xf32>
    %22 = arith.addf %21, %2 : vector<20x1xf32>
    %cst_17 = arith.constant 1.000000e+00 : f32
    %23 = vector.broadcast %cst_17 : f32 to vector<1x20xf32>
    %24 = arith.addf %12, %22 : vector<20x1xf32>
    %cst_18 = arith.constant dense<0.000000e+00> : vector<1x1xf32>
    %25 = tpu.matmul %23, %24, %cst_18 {dimension_numbers = #tpu.dot_dimension_numbers<[1], [0], [0], [1], [0, 0, 1, 1], [], []>} : vector<1x20xf32>, vector<20x1xf32>, vector<1x1xf32> -> vector<1x1xf32>
    %26 = math.absf %12 : vector<20x1xf32>
    %27 = math.absf %22 : vector<20x1xf32>
    %28 = arith.addf %26, %27 : vector<20x1xf32>
    %cst_19 = arith.constant dense<0.000000e+00> : vector<1x1xf32>
    %29 = tpu.matmul %23, %28, %cst_19 {dimension_numbers = #tpu.dot_dimension_numbers<[1], [0], [0], [1], [0, 0, 1, 1], [], []>} : vector<1x20xf32>, vector<20x1xf32>, vector<1x1xf32> -> vector<1x1xf32>
    %30 = tpu.bitcast %29 : vector<1x1xf32> -> vector<1x1xi32>
    %c23_i32 = arith.constant 23 : i32
    %31 = vector.broadcast %c23_i32 : i32 to vector<1x1xi32>
    %32 = arith.shrsi %30, %31 : vector<1x1xi32>
    %c255_i32 = arith.constant 255 : i32
    %33 = vector.broadcast %c255_i32 : i32 to vector<1x1xi32>
    %34 = arith.andi %32, %33 : vector<1x1xi32>
    %c8388607_i32 = arith.constant 8388607 : i32
    %35 = vector.broadcast %c8388607_i32 : i32 to vector<1x1xi32>
    %36 = arith.andi %30, %35 : vector<1x1xi32>
    %cst_20 = arith.constant 1.000000e+00 : f32
    %37 = vector.broadcast %cst_20 : f32 to vector<1x1xf32>
    %38 = arith.cmpf ogt, %29, %37 : vector<1x1xf32>
    %c127_i32 = arith.constant 127 : i32
    %39 = vector.broadcast %c127_i32 : i32 to vector<1x1xi32>
    %40 = arith.subi %34, %39 : vector<1x1xi32>
    %c0_i32 = arith.constant 0 : i32
    %41 = vector.broadcast %c0_i32 : i32 to vector<1x1xi32>
    %42 = arith.cmpi ne, %36, %41 : vector<1x1xi32>
    %43 = arith.extui %42 : vector<1x1xi1> to vector<1x1xi32>
    %44 = arith.addi %40, %43 : vector<1x1xi32>
    %c0_i32_21 = arith.constant 0 : i32
    %45 = vector.broadcast %c0_i32_21 : i32 to vector<1x1xi32>
    %46 = arith.select %38, %44, %45 : vector<1x1xi1>, vector<1x1xi32>
    %c0_i32_22 = arith.constant 0 : i32
    %c126_i32 = arith.constant 126 : i32
    %47 = vector.broadcast %c0_i32_22 : i32 to vector<1x1xi32>
    %48 = arith.maxsi %47, %46 : vector<1x1xi32>
    %49 = vector.broadcast %c126_i32 : i32 to vector<1x1xi32>
    %50 = arith.minsi %49, %48 : vector<1x1xi32>
    %c127_i32_23 = arith.constant 127 : i32
    %51 = vector.broadcast %c127_i32_23 : i32 to vector<1x1xi32>
    %52 = arith.subi %51, %50 : vector<1x1xi32>
    %c23_i32_24 = arith.constant 23 : i32
    %53 = vector.broadcast %c23_i32_24 : i32 to vector<1x1xi32>
    %54 = arith.shli %52, %53 : vector<1x1xi32>
    %55 = tpu.bitcast %54 : vector<1x1xi32> -> vector<1x1xf32>
    %56 = arith.mulf %25, %55 : vector<1x1xf32>
    %c0_25 = arith.constant 0 : index
    %c0_26 = arith.constant 0 : index
    %57 = vector.load %arg5[%c0_25, %c0_26] : memref<1x1xf32, #tpu.memory_space<vmem>>, vector<1x1xf32>
    tpu.vector_store %arg5[%c0_25, %c0_26], %56 {strides = array<i32>} : memref<1x1xf32, #tpu.memory_space<vmem>>, vector<1x1xf32>,
    return
  }
  func.func @transform_0(%arg0: i32) -> (i32, i32) {
    %c0_i32 = arith.constant 0 : i32
    %c0_i32_0 = arith.constant 0 : i32
    return %c0_i32, %arg0 : i32, i32
  }
  func.func @transform_1(%arg0: i32) -> (i32, i32) {
    %c0_i32 = arith.constant 0 : i32
    %c0_i32_0 = arith.constant 0 : i32
    return %c0_i32, %arg0 : i32, i32
  }
  func.func @transform_2(%arg0: i32) -> (i32, i32) {
    %c0_i32 = arith.constant 0 : i32
    %c0_i32_0 = arith.constant 0 : i32
    %c0_i32_1 = arith.constant 0 : i32
    return %c0_i32, %c0_i32_0 : i32, i32
  }
  func.func @transform_3(%arg0: i32) -> (i32, i32) {
    %c0_i32 = arith.constant 0 : i32
    %c0_i32_0 = arith.constant 0 : i32
    %c0_i32_1 = arith.constant 0 : i32
    return %c0_i32, %c0_i32_0 : i32, i32
  }
  func.func @transform_4(%arg0: i32) -> (i32, i32) {
    %c0_i32 = arith.constant 0 : i32
    %c0_i32_0 = arith.constant 0 : i32
    return %c0_i32, %arg0 : i32, i32
  }
}

</mosaic_0001>

<bundles_post_ra>
// kernel: fixed_hidden_mlp_batched.1
= control target key start
LH: loop header
LB: loop body
LE: loop exit
PB: predicated region body
PF: predicated region fallthrough
CT: control target
= control target key end

     0   :  { %v987_v2 = vmov 0.0|0.0   ;;  %vm988_vm0 = vmmov 0   ;;  %v989_v4 = vmov 0.0   ;;  %s1195_s0 = inlined_call_operand.vmem [shape: f32[20,1], index: 0, kind: input, shape index: {}]   ;;  %s1196_s1 = inlined_call_operand.vmem [shape: f32[20,1], index: 1, kind: input, shape index: {}]   ;;  %s1197_s2 = inlined_call_operand.vmem [shape: f32[48,20], index: 2, kind: input, shape index: {}]   ;;  %s1198_s3 = inlined_call_operand.vmem [shape: f32[20,1], index: 3, kind: input, shape index: {}]   ;;  %s1199_s4 = inlined_call_operand.hbm [shape: f32[1,1], index: 4, kind: output, shape index: {}]  }
   0x1   :  { %v27_v0 = vld [vmem:[%s1195_s0] sm:$0xff]  ;;  %v28_v1 = vld [vmem:[%s1195_s0 + $0x8] sm:$0xff]  ;;  %933 = vmatprep.subr.bf16.mxu0 %v987_v2  ;;  %936 = vmatprep.subr.bf16.mxu1 %v987_v2 }
   0x2   :  { %v934_v3 = vpack.c.bf16 %v28_v1, %v27_v0  ;;  %831 = vmatprep.mubr.msk.f32.mxu0 %vm988_vm0, %v989_v4  ;;  %846 = vmatprep.mubr.msk.f32.mxu1 %vm988_vm0, %v989_v4 }
   0x3   :  { %9 = vsyncpa [#allocation3], 0  ;;  %v29_v5 = vld [vmem:[%s1195_s0 + $0x10] sm:$0xf]  ;;  %vm40_vm1 = vcmask 1043456   ;;  %v1037_v6 = vld [vmem:[%s1197_s2] sm:$0xff] }
   0x4   :  { %935 = vmatpush3.bf16.msra.mxu0 %v934_v3  ;;  %vm30_vm2 = vcmask 162816   ;;  %v1048_v7 = vld [vmem:[%s1197_s2 + $0x8] sm:$0xff]  ;;  %v1057_v8 = vld [vmem:[%s1197_s2 + $0x10] sm:$0xf]  ;;  %v1066_v11 = vld [vmem:[%s1198_s3] sm:$0xff]  ;;  %vm736_vm7 = vcmask 0  }
   0x5   :  { %829 = vmatprep.subr.mxu0 %v989_v4  ;;  %v1071_v12 = vld [vmem:[%s1198_s3 + $0x8] sm:$0xff]  ;;  %v1078_v17 = vld [vmem:[%s1198_s3 + $0x10] sm:$0xf]  ;;  %v302_v20 = vld [vmem:[%s1196_s1] sm:$0xff] }
   0x6   :  { %v303_v21 = vld [vmem:[%s1196_s1 + $0x8] sm:$0xff]  ;;  %v21_v24 = vld [vmem:[%s1197_s2 + $0x18] sm:$0xff]  ;;  %v22_v26 = vld [vmem:[%s1197_s2 + $0x20] sm:$0xff] }
   0x7   :  { %v943_v25 = vpack.c.bf16 %v303_v21, %v302_v20  ;;  %v304_v27 = vld [vmem:[%s1196_s1 + $0x10] sm:$0xf]  ;;  %v23_v28 = vld [vmem:[%s1197_s2 + $0x28] sm:$0xf]  ;;  %s992_s1 = smov [#allocation2]  }
   0x8   :  { %830 = vmatpush3.msk.msra.mxu0 %vm40_vm1, %v29_v5  ;;  %s744_s2 = sshll.u32 %s992_s1, 4  ;;  %s745_s2 = int_to_ptr.vmem [resolvable:$true] %s744_s2 }
   0x9   :  { %832 = vmatmul.mubr.msk.f32.vlgmr.msra.gmra.mrb[0].mxu0 %vm30_vm2, %v1037_v6  ;;  %939 = vmatprep.subr.bf16.mxu0 %v987_v2  ;;  %s963_s17 = scalar_lea.vmem %s745_s2, 16  ;;  %s967_s18 = scalar_lea.vmem %s745_s2, 32 }
   0xa   :  { %834 = vmatprep.mubr.msk.f32.mxu0 %vm988_vm0, %v989_v4  ;;  %p964_p0 = scmp.ne.s32.totalorder %s745_s2, %s963_s17  ;;  %p968_p1 = scmp.lt.s32.totalorder %s745_s2, %s745_s2 }
   0xb   :  { %p969_p2 = scmp.lt.s32.totalorder %s967_s18, %s963_s17 }
   0xd   :  { %835 = vmatmul.mubr.msk.f32.gmra.mrb[2].mxu0 %vm30_vm2, %v1048_v7  ;;  %p970_p3 = por %p969_p2, %p968_p1 }
   0xe   :  { %837 = vmatprep.mubr.msk.f32.mxu0 %vm988_vm0, %v989_v4 }
   0xf   :  { %p971_p4 = pnand %p970_p3, %p964_p0 }
  0x11   :  { %838 = vmatmul.mubr.msk.f32.gmra.mrb[4].mxu0 %vm30_vm2, %v1057_v8 }
  0x12   :  { %861 = vmatprep.mubr.msk.f32.mxu0 %vm988_vm0, %v989_v4 }
  0xdc   :  { %v110_v9 = vpop.f32.mrb[0].mxu0 }
  0xdd   :  { %v833_v10 = vpop.f32.mrb[1].mxu0  ;;  %v111_v14 = vadd.f32 %v110_v9, %v1066_v11 }
  0xe0   :  { %v115_v13 = vpop.f32.mrb[2].mxu0 }
  0xe1   :  { %v116_v15 = vadd.f32 %v115_v13, %v1071_v12  ;;  %v836_v16 = vpop.f32.mrb[3].mxu0 }
  0xe3   :  { %v937_v18 = vpack.c.bf16 %v116_v15, %v111_v14 }
  0xe4   :  { %v120_v19 = vpop.f32.mrb[4].mxu0 }
  0xe5   :  { %v121_v22 = vadd.f32 %v120_v19, %v1078_v17  ;;  %938 = vmatpush3.bf16.msra.mxu1 %v937_v18  ;;  %v839_v23 = vpop.f32.mrb[5].mxu0 }
  0xe6   :  { %844 = vmatprep.subr.mxu1 %v989_v4 }
  0xe9   :  { %845 = vmatpush3.msk.msra.mxu1 %vm40_vm1, %v121_v22 }
  0xea   :  { %847 = vmatmul.mubr.msk.f32.vlgmr.msra.gmra.mrb[0].mxu1 %vm30_vm2, %v21_v24  ;;  %942 = vmatprep.subr.bf16.mxu1 %v987_v2 }
  0xeb   :  { %849 = vmatprep.mubr.msk.f32.mxu1 %vm988_vm0, %v989_v4  ;;  %944 = vmatpush3.bf16.msra.mxu1 %v943_v25 }
  0xec   :  { %874 = vmatprep.subr.mxu1 %v989_v4 }
  0xee   :  { %850 = vmatmul.mubr.msk.f32.gmra.mrb[2].mxu1 %vm30_vm2, %v22_v26 }
  0xef   :  { %852 = vmatprep.mubr.msk.f32.mxu1 %vm988_vm0, %v989_v4  ;;  %875 = vmatpush3.msk.msra.mxu1 %vm40_vm1, %v304_v27 }
  0xf0   :  { %948 = vmatprep.subr.bf16.mxu1 %v987_v2 }
  0xf2   :  { %853 = vmatmul.mubr.msk.f32.gmra.mrb[4].mxu1 %vm30_vm2, %v23_v28 }
  0xf3   :  { %876 = vmatprep.mubr.msk.f32.mxu1 %vm988_vm0, %v989_v4 }
  0xf6   :  { %877 = vmatmul.mubr.msk.f32.vlgmr.msra.gmra.mrb[6].mxu1 %vm30_vm2, %v1037_v6 }
  0xf7   :  { %879 = vmatprep.mubr.msk.f32.mxu1 %vm988_vm0, %v989_v4 }
  0xfa   :  { %880 = vmatmul.mubr.msk.f32.gmra.mrb[8].mxu1 %vm30_vm2, %v1048_v7 }
  0xfb   :  { %882 = vmatprep.mubr.msk.f32.mxu1 %vm988_vm0, %v989_v4 }
  0xfe   :  { %883 = vmatmul.mubr.msk.f32.gmra.mrb[10].mxu1 %vm30_vm2, %v1057_v8 }
  0xff   :  { %906 = vmatprep.mubr.msk.f32.mxu1 %vm988_vm0, %v989_v4 }
 0x1bd   :  { %v202_v29 = vpop.f32.mrb[0].mxu1 }
 0x1be   :  { %v848_v30 = vpop.f32.mrb[1].mxu1  ;;  %v203_v31 = vadd.f32 1.0, %v202_v29 }
 0x1c0   :  { %v216_v35 = vmax.f32 %v203_v31, 0.0 }
 0x1c1   :  { %v207_v32 = vpop.f32.mrb[2].mxu1 }
 0x1c2   :  { %v208_v33 = vadd.f32 1.0, %v207_v32  ;;  %v851_v34 = vpop.f32.mrb[3].mxu1 }
 0x1c4   :  { %v217_v36 = vmax.f32 %v208_v33, 0.0 }
 0x1c5   :  { %v212_v37 = vpop.f32.mrb[4].mxu1 }
 0x1c6   :  { %v940_v38 = vpack.c.bf16 %v217_v36, %v216_v35  ;;  %v213_v39 = vadd.f32 1.0, %v212_v37  ;;  %v854_v40 = vpop.f32.mrb[5].mxu1  ;;  %v990_v35 = vmov 1.0  }
 0x1c8   :  { %v218_v41 = vmax.f32 %v213_v39, 0.0  ;;  %941 = vmatpush3.bf16.msra.mxu0 %v940_v38 }
 0x1c9   :  { %v374_v42 = vpop.f32.mrb[6].mxu1  ;;  %859 = vmatprep.subr.mxu0 %v989_v4 }
 0x1ca   :  { %v878_v43 = vpop.f32.mrb[7].mxu1  ;;  %v375_v45 = vadd.f32 %v374_v42, %v1066_v11 }
 0x1cb   :  { %v991_v43 = vmov 0  }
 0x1cc   :  { %860 = vmatpush3.msk.msra.mxu0 %vm40_vm1, %v218_v41 }
 0x1cd   :  { %862 = vmatmul.mubr.msk.f32.vlgmr.msra.gmra.mrb[6].mxu0 %vm30_vm2, %v1037_v6  ;;  %v379_v44 = vpop.f32.mrb[8].mxu1  ;;  %945 = vmatprep.subr.bf16.mxu0 %v987_v2 }
 0x1ce   :  { %v380_v46 = vadd.f32 %v379_v44, %v1071_v12  ;;  %v881_v47 = vpop.f32.mrb[9].mxu1  ;;  %864 = vmatprep.mubr.msk.f32.mxu0 %vm988_vm0, %v989_v4 }
 0x1d0   :  { %v946_v48 = vpack.c.bf16 %v380_v46, %v375_v45 }
 0x1d1   :  { %865 = vmatmul.mubr.msk.f32.gmra.mrb[8].mxu0 %vm30_vm2, %v1048_v7  ;;  %v384_v49 = vpop.f32.mrb[10].mxu1 }
 0x1d2   :  { %947 = vmatpush3.bf16.msra.mxu0 %v946_v48  ;;  %867 = vmatprep.mubr.msk.f32.mxu0 %vm988_vm0, %v989_v4  ;;  %v385_v50 = vadd.f32 %v384_v49, %v1078_v17  ;;  %v884_v51 = vpop.f32.mrb[11].mxu1 }
 0x1d3   :  { %889 = vmatprep.subr.mxu0 %v989_v4 }
 0x1d5   :  { %868 = vmatmul.mubr.msk.f32.gmra.mrb[10].mxu0 %vm30_vm2, %v1057_v8 }
 0x1d6   :  { %890 = vmatpush3.msk.msra.mxu0 %vm40_vm1, %v385_v50  ;;  %891 = vmatprep.mubr.msk.f32.mxu0 %vm988_vm0, %v989_v4 }
 0x1d7   :  { %951 = vmatprep.subr.bf16.mxu0 %v987_v2 }
 0x1d9   :  { %892 = vmatmul.mubr.msk.f32.vlgmr.msra.gmra.mrb[12].mxu0 %vm30_vm2, %v21_v24 }
 0x1da   :  { %894 = vmatprep.mubr.msk.f32.mxu0 %vm988_vm0, %v989_v4 }
 0x1dd   :  { %895 = vmatmul.mubr.msk.f32.gmra.mrb[14].mxu0 %vm30_vm2, %v22_v26 }
 0x1de   :  { %897 = vmatprep.mubr.msk.f32.mxu0 %vm988_vm0, %v989_v4 }
 0x1e1   :  { %898 = vmatmul.mubr.msk.f32.gmra.mrb[16].mxu0 %vm30_vm2, %v23_v28 }
 0x1e2   :  { %921 = vmatprep.mubr.msk.f32.mxu0 %vm988_vm0, %v989_v4 }
 0x2a0   :  { %v288_v52 = vpop.f32.mrb[6].mxu0 }
 0x2a1   :  { %v863_v53 = vpop.f32.mrb[7].mxu0  ;;  %v289_v14 = vadd.f32 %v288_v52, %v1066_v11 }
 0x2a3   :  { %v636_v16 = vand.u32 2147483647, %v289_v14 }
 0x2a4   :  { %v293_v54 = vpop.f32.mrb[8].mxu0 }
 0x2a5   :  { %v866_v55 = vpop.f32.mrb[9].mxu0  ;;  %v294_v18 = vadd.f32 %v293_v54, %v1071_v12 }
 0x2a8   :  { %v298_v56 = vpop.f32.mrb[10].mxu0 }
 0x2a9   :  { %v869_v57 = vpop.f32.mrb[11].mxu0  ;;  %v299_v24 = vadd.f32 %v298_v56, %v1078_v17 }
 0x2ab   :  { %v638_v31 = vand.u32 2147483647, %v299_v24 }
 0x2ac   :  { %v457_v58 = vpop.f32.mrb[12].mxu0 }
 0x2ad   :  { %v893_v59 = vpop.f32.mrb[13].mxu0  ;;  %v458_v60 = vadd.f32 1.0, %v457_v58 }
 0x2af   :  { %v471_v0 = vmax.f32 %v458_v60, 0.0 }
 0x2b0   :  { %v462_v61 = vpop.f32.mrb[14].mxu0 }
 0x2b1   :  { %v463_v62 = vadd.f32 1.0, %v462_v61  ;;  %v896_v63 = vpop.f32.mrb[15].mxu0 }
 0x2b3   :  { %v472_v1 = vmax.f32 %v463_v62, 0.0 }
 0x2b4   :  { %v467_v3 = vpop.f32.mrb[16].mxu0 }
 0x2b5   :  { %v949_v5 = vpack.c.bf16 %v472_v1, %v471_v0  ;;  %v468_v9 = vadd.f32 1.0, %v467_v3  ;;  %v899_v10 = vpop.f32.mrb[17].mxu0 }
 0x2b7   :  { %v473_v13 = vmax.f32 %v468_v9, 0.0  ;;  %950 = vmatpush3.bf16.msra.mxu1 %v949_v5 }
 0x2b8   :  { %904 = vmatprep.subr.mxu1 %v989_v4 }
 0x2bb   :  { %905 = vmatpush3.msk.msra.mxu1 %vm40_vm1, %v473_v13 }
 0x2bc   :  { %907 = vmatmul.mubr.msk.f32.vlgmr.msra.gmra.mrb[12].mxu1 %vm30_vm2, %v1037_v6  ;;  %954 = vmatprep.subr.bf16.mxu1 %v987_v2 }
 0x2bd   :  { %909 = vmatprep.mubr.msk.f32.mxu1 %vm988_vm0, %v989_v4 }
 0x2c0   :  { %910 = vmatmul.mubr.msk.f32.gmra.mrb[14].mxu1 %vm30_vm2, %v1048_v7 }
 0x2c1   :  { %912 = vmatprep.mubr.msk.f32.mxu1 %vm988_vm0, %v989_v4 }
 0x2c4   :  { %913 = vmatmul.mubr.msk.f32.gmra.mrb[16].mxu1 %vm30_vm2, %v1057_v8  ;;  %v637_v8 = vand.u32 2147483647, %v294_v18 }
 0x2c5   :  { %930 = vmatprep.mubr.msk.f32.mxu1 %vm988_vm0, %v989_v4 }
 0x38f   :  { %v543_v6 = vpop.f32.mrb[12].mxu1 }
 0x390   :  { %v544_v2 = vadd.f32 %v543_v6, %v1066_v11  ;;  %v908_v15 = vpop.f32.mrb[13].mxu1 }
 0x392   :  { %v557_v19 = vadd.f32 %v544_v2, %v289_v14  ;;  %v639_v7 = vand.u32 2147483647, %v544_v2 }
 0x393   :  { %v548_v20 = vpop.f32.mrb[14].mxu1 }
 0x394   :  { %v642_v21 = vadd.f32 %v639_v7, %v636_v16  ;;  %v549_v22 = vadd.f32 %v548_v20, %v1071_v12  ;;  %v911_v23 = vpop.f32.mrb[15].mxu1 }
 0x396   :  { %v558_v25 = vadd.f32 %v549_v22, %v294_v18  ;;  %v640_v26 = vand.u32 2147483647, %v549_v22 }
 0x397   :  { %v553_v27 = vpop.f32.mrb[16].mxu1 }
 0x398   :  { %v952_v28 = vpack.c.bf16 %v558_v25, %v557_v19  ;;  %v643_v29 = vadd.f32 %v640_v26, %v637_v8  ;;  %v554_v11 = vadd.f32 %v553_v27, %v1078_v17  ;;  %v914_v30 = vpop.f32.mrb[17].mxu1 }
 0x39a   :  { %v955_v32 = vpack.c.bf16 %v643_v29, %v642_v21  ;;  %v559_v33 = vadd.f32 %v554_v11, %v299_v24  ;;  %v641_v34 = vand.u32 2147483647, %v554_v11  ;;  %953 = vmatpush3.bf16.msra.mxu0 %v952_v28 }
 0x39b   :  { %919 = vmatprep.subr.mxu0 %v989_v4 }
 0x39c   :  { %v644_v12 = vadd.f32 %v641_v34, %v638_v31  ;;  %956 = vmatpush3.bf16.msra.mxu1 %v955_v32 }
 0x39d   :  { %928 = vmatprep.subr.mxu1 %v989_v4 }
 0x39e   :  { %920 = vmatpush3.msk.msra.mxu0 %vm40_vm1, %v559_v33 }
 0x39f   :  { %922 = vmatmul.mubr.msk.f32.vlgmr.msra.gmra.mrb[18].mxu0 %vm30_vm2, %v990_v35 }
 0x3a0   :  { %929 = vmatpush3.msk.msra.mxu1 %vm40_vm1, %v644_v12 }
 0x3a1   :  { %931 = vmatmul.mubr.msk.f32.vlgmr.msra.gmra.mrb[18].mxu1 %vm30_vm2, %v990_v35 }
 0x472   :  { %v632_v17 = vpop.f32.mrb[18].mxu0 }
 0x473   :  { %v923_v36 = vpop.f32.mrb[19].mxu0 }
 0x474   :  { %v714_v37 = vpop.f32.mrb[18].mxu1 }
 0x475   :  { %v719_v38 = vshra.s32 %v714_v37, 23  ;;  %v721_v39 = vand.u32 8388607, %v714_v37  ;;  %v932_v40 = vpop.f32.mrb[19].mxu1  ;;  %vm722_vm4 = vcmp.gt.f32.partialorder %v714_v37, 1.0 }
 0x477   :  { %v720_v41 = vand.u32 255, %v719_v38  ;;  %vm724_vm3 = vcmp.ne.s32.totalorder %v721_v39, 0 }
 0x478   :  { %v725_v4 = vsel %vm724_vm3, 1, %v991_v43 }
 0x479   :  { %v780_v42 = vadd.s32 4294967169, %v720_v41 }
 0x47b   :  { %v726_v44 = vadd.s32 %v780_v42, %v725_v4 }
 0x47d   :  { %v727_v45 = vsel %vm722_vm4, %v726_v44, 0 }
 0x47e   :  { %vm728_vm5 = vcmp.gt.s32.totalorder %v727_v45, 0 }
 0x47f   :  { %v729_v46 = vsel %vm728_vm5, %v727_v45, 0 }
 0x480   :  { %vm730_vm6 = vcmp.lt.s32.totalorder %v729_v46, 126 }
 0x481   :  { %v731_v47 = vsel %vm730_vm6, %v729_v46, 126 }
 0x482   :  { %v732_v48 = vsub.s32 127, %v731_v47 }
 0x484   :  { %v733_v49 = vshll.u32 %v732_v48, 23 }
 0x486   :  { %v735_v50 = vmul.f32 %v733_v49, %v632_v17 }
 0x488   :  { %737 = vst.msk [vmem:[#allocation2] sm:$0x1] %vm736_vm7, %v735_v50 }
 0x489   :  { %974 = shalt.err (!%p971_p4)
}
 0x48a   :  { %s975_s21 = scalar_lea.hbm %s1199_s4, 16 }
 0x48b   :  { %p976_p5 = scmp.ne.s32.totalorder %s1199_s4, %s975_s21  ;;  %p979_p6 = scmp.lt.u32.totalorder %s975_s21, %s1199_s4 }
 0x48d   :  { %p981_p7 = pnand %p979_p6, %p976_p5 }
 0x48f   :  { %984 = shalt.err (!%p981_p7)
}
 0x490   :  { %747 = dma.vmem_to_hbm [thread:$0]  %s745_s2, 16, %s1199_s4, [#allocation3]  }
 0x491   :  { %985 = dma.done.wait [#allocation3], 16  }
 0x492   :  { %986 = vsyncadd [#allocation3], 4294967280 }
 0x493   :  { %751 = vsyncpa [#allocation3], 1 }

</bundles_post_ra>
